<compile_context>
chip_gen: v7x
topology: tpu7x:2x2x1
jax: 0.10.0
libtpu: 0.0.40
codegen_flags: <defaults>
</compile_context>

<pallas_src>
import math
import functools

import jax
import jax.numpy as jnp
from jax import lax
from jax.experimental import pallas as pl
from jax.experimental.pallas import tpu as pltpu


def _round_up(x, m):
    return ((x + m - 1) // m) * m


def _vmem_capacity_bytes():
    """Best-effort trace-time VMEM query; conservative (v7x per-TC) fallback."""
    try:
        info = pltpu.get_tpu_info()
        cap = getattr(info, "vmem_capacity_bytes", None)
        if cap:
            return int(cap)
    except Exception:
        pass
    return 64 << 20


# ---------------------------------------------------------------------------
# Kernel 1: per-column inverse L2 norm of the weight (norm over dim=0).
# Grid tiles out_features; the (1, in) output block has a constant block index,
# so it stays resident in VMEM and acts as the accumulator.
# ---------------------------------------------------------------------------
def _col_inv_norm_kernel(w_ref, inv_ref):
    j = pl.program_id(0)

    @pl.when(j == 0)
    def _():
        inv_ref[...] = jnp.zeros_like(inv_ref)

    w = w_ref[...].astype(jnp.float32)
    inv_ref[...] += jnp.sum(w * w, axis=0, keepdims=True)

    @pl.when(j == pl.num_programs(0) - 1)
    def _():
        # Exact rsqrt (EUP slot) instead of sqrt + divide on the VALU.
        inv_ref[...] = lax.rsqrt(inv_ref[...])


def _column_inv_norm(weight):
    out_p, in_f = weight.shape
    # block_out: largest multiple of 128 dividing out_p whose tile stays ~<= 4 MiB
    # (HBM-bound reduction sweet spot); 128 always divides out_p as a fallback.
    block_out = 128
    for cand in range(min(out_p, 1024), 127, -128):
        if out_p % cand == 0 and cand * in_f * 4 <= (4 << 20):
            block_out = cand
            break
    k1_bytes = 2 * block_out * in_f * 4 + 2 * in_f * 4 + (1 << 20)
    k1_limit = int(max(16 << 20, k1_bytes + (4 << 20)))

    return pl.pallas_call(
        _col_inv_norm_kernel,
        out_shape=jax.ShapeDtypeStruct((1, in_f), jnp.float32),
        grid_spec=pltpu.PrefetchScalarGridSpec(
            num_scalar_prefetch=0,
            grid=(out_p // block_out,),
            in_specs=[pl.BlockSpec((block_out, in_f), lambda j: (j, 0))],
            out_specs=pl.BlockSpec((1, in_f), lambda j: (0, 0)),
        ),
        compiler_params=pltpu.CompilerParams(
            dimension_semantics=("arbitrary",),   # reduction axis -> serial
            vmem_limit_bytes=k1_limit,
        ),
    )(weight)


# ---------------------------------------------------------------------------
# Kernel 2: y = (x * inv_norm) @ W^T + b, tiled over (batch, out_features).
# ---------------------------------------------------------------------------
def _normalized_linear_kernel(x_ref, inv_ref, w_ref, b_ref, o_ref, xs_ref, *, cache_xs):
    if cache_xs:
        # N is serial ("arbitrary") on each core: scale x once per batch tile.
        @pl.when(pl.program_id(1) == 0)
        def _():
            xs_ref[...] = (x_ref[...].astype(jnp.float32) * inv_ref[...]).astype(xs_ref.dtype)
        xs = xs_ref[...]
    else:
        # Single batch tile: recompute per N tile so both grid axes can be "parallel".
        xs = (x_ref[...].astype(jnp.float32) * inv_ref[...]).astype(xs_ref.dtype)

    y = lax.dot_general(                         # contract last dims: no W transpose
        xs, w_ref[...],
        dimension_numbers=(((1,), (1,)), ((), ())),
        preferred_element_type=jnp.float32,
    )                                            # (bb, tn) f32
    o_ref[...] = (y + b_ref[...]).astype(o_ref.dtype)


def normalized_linear(x, weight, bias=None, *, block_b=None, block_n=None,
                      use_bf16_matmul=True):
    """Forward of NormalizedLinear.

    x:      (B, in_features)
    weight: (out_features, in_features)
    bias:   (out_features,) or None
    use_bf16_matmul: bf16 MXU path (default, perf); False = exact f32 path.
    """
    B, in_features = x.shape
    out_features, in_w = weight.shape
    assert in_w == in_features

    # ---- generation-aware tiling targets ---------------------------------
    vmem_cap = _vmem_capacity_bytes()
    if vmem_cap <= (64 << 20):          # v7x-class: 64 MiB per TensorCore
        tn_target, bb_target, budget = 256, 256, 44 << 20
    else:                               # v5e / v6e: 128 MiB
        tn_target, bb_target, budget = 512, 512, 96 << 20

    # ---- pad out_features so output stores are lane-dense ----------------
    if block_n is not None:
        tn = _round_up(max(int(block_n), 128), 128)
        out_p = _round_up(out_features, tn)
    else:
        out_p = _round_up(out_features, 128)
        tn = 128
        for cand in range(min(out_p, tn_target), 127, -128):
            if out_p % cand == 0:
                tn = cand
                break

    # Padded weight rows / bias entries are zero and don't perturb column norms.
    if out_p != out_features:
        weight_p = jnp.zeros((out_p, in_features), weight.dtype).at[:out_features].set(weight)
    else:
        weight_p = weight
    bias2d = jnp.zeros((1, out_p), jnp.float32)
    if bias is not None:
        bias2d = bias2d.at[0, :out_features].set(bias.astype(jnp.float32))

    # ---- column inverse norms computed once from the full-precision weight
    inv_norm = _column_inv_norm(weight_p.astype(jnp.float32))          # (1, in) f32

    # ---- matmul operand dtype: cast the weight ONCE in the wrapper -------
    compute_dtype = jnp.bfloat16 if use_bf16_matmul else jnp.float32
    w_mm = weight_p.astype(compute_dtype)

    # ---- batch tile --------------------------------------------------------
    if block_b is not None:
        bb = _round_up(max(int(block_b), 8), 8)
    else:
        bb = min(bb_target, _round_up(B, 8))

    x_isz = jnp.dtype(x.dtype).itemsize
    w_isz = jnp.dtype(compute_dtype).itemsize
    c_isz = jnp.dtype(compute_dtype).itemsize

    def bytes_needed(bb_, tn_):
        return (2 * bb_ * in_features * x_isz        # x tiles (double-buffered)
                + 2 * tn_ * in_features * w_isz      # weight tiles (double-buffered)
                + 2 * bb_ * tn_ * 4                  # output tiles
                + bb_ * in_features * c_isz          # xs scratch
                + 2 * in_features * 4                # inv_norm (constant index, tiny)
                + 2 * tn_ * 4                        # bias tile
                + (1 << 20))                         # slack

    # Shrink tiles until the working set fits the per-generation budget.
    while bytes_needed(bb, tn) > budget:
        if tn > 128:
            tn = 128                                 # still a multiple of 128, still divides out_p
        elif bb > 8:
            bb = max(8, _round_up(bb // 2, 8))
        else:
            break

    # ---- pad ragged batch so every tile is full and pipelined -------------
    B_p = _round_up(B, bb)
    if B_p != B:
        x_p = jnp.zeros((B_p, in_features), x.dtype).at[:B].set(x)
    else:
        x_p = x

    num_b = B_p // bb
    num_n = out_p // tn

    # xs caching requires the N axis to be serial on each core; with a single
    # batch tile we instead recompute xs per N tile and let megacore shard N.
    cache_xs = (num_b > 1) or (num_n == 1)
    dim_sem = ("parallel", "arbitrary") if cache_xs else ("parallel", "parallel")

    # VMEM limit = requirement + headroom (never clamped below the requirement).
    vmem_limit = int(max(16 << 20, bytes_needed(bb, tn) + (8 << 20)))

    kernel = functools.partial(_normalized_linear_kernel, cache_xs=cache_xs)
    y = pl.pallas_call(
        kernel,
        out_shape=jax.ShapeDtypeStruct((B_p, out_p), x.dtype),
        grid_spec=pltpu.PrefetchScalarGridSpec(
            num_scalar_prefetch=0,
            grid=(num_b, num_n),                     # N is the inner / fastest axis
            in_specs=[
                pl.BlockSpec((bb, in_features), lambda i, n: (i, 0)),   # x (resident over n)
                pl.BlockSpec((1, in_features), lambda i, n: (0, 0)),    # inv_norm (resident)
                pl.BlockSpec((tn, in_features), lambda i, n: (n, 0)),   # weight tile
                pl.BlockSpec((1, tn), lambda i, n: (0, n)),             # bias tile
            ],
            out_specs=pl.BlockSpec((bb, tn), lambda i, n: (i, n)),
            scratch_shapes=[pltpu.VMEM((bb, in_features), compute_dtype)],  # xs cache
        ),
        compiler_params=pltpu.CompilerParams(
            dimension_semantics=dim_sem,
            vmem_limit_bytes=vmem_limit,
        ),
    )(x_p, inv_norm, w_mm, bias2d)

    return y[:B, :out_features]


def init_params(key, in_features, out_features):
    """Deterministic init matching nn.Linear's kaiming_uniform_(a=sqrt(5))."""
    kw, kb = jax.random.split(key)
    bound = 1.0 / math.sqrt(in_features)
    weight = jax.random.uniform(
        kw, (out_features, in_features), jnp.float32, -bound, bound
    )
    bias = jax.random.uniform(kb, (out_features,), jnp.float32, -bound, bound)
    return weight, bias


def reference(x, weight, bias):
    col_norm = jnp.sqrt(jnp.sum(weight.astype(jnp.float32) ** 2, axis=0, keepdims=True))
    w_n = weight / col_norm
    y = x @ w_n.T
    if bias is not None:
        y = y + bias
    return y


if __name__ == "__main__":
    key = jax.random.PRNGKey(0)
    k1, k2, k3, k4 = jax.random.split(key, 4)

    # Case 1: tiny single-tile layer, exact f32 path (1e-5 check).
    B, IN, OUT = 8, 32, 64
    x = jax.random.normal(k1, (B, IN), dtype=jnp.float32)
    w, b = init_params(k2, IN, OUT)
    f32_fn = jax.jit(functools.partial(normalized_linear, use_bf16_matmul=False))
    y = f32_fn(x, w, b)
    jax.block_until_ready(y)
    y_ref = reference(x, w, b)
    assert y.shape == (B, OUT)
    err = float(jnp.max(jnp.abs(y - y_ref)))
    assert jnp.allclose(y, y_ref, atol=1e-5, rtol=1e-5), f"max abs err {err}"

    # Case 2: ragged batch + padded out_features + 2-D (batch, N) grid, exact f32 path.
    B2, IN2, OUT2 = 20, 64, 300
    x2 = jax.random.normal(k3, (B2, IN2), dtype=jnp.float32)
    w2, b2 = init_params(k4, IN2, OUT2)
    tiled_fn = jax.jit(functools.partial(
        normalized_linear, use_bf16_matmul=False, block_b=8, block_n=128))
    y2 = tiled_fn(x2, w2, b2)
    jax.block_until_ready(y2)
    y2_ref = reference(x2, w2, b2)
    assert y2.shape == (B2, OUT2)
    err2 = float(jnp.max(jnp.abs(y2 - y2_ref)))
    assert jnp.allclose(y2, y2_ref, atol=1e-5, rtol=1e-5), f"max abs err {err2}"

    # Case 3: default perf path (bf16 MXU, wrapper-cast weight) — loose smoke check.
    bf16_fn = jax.jit(normalized_linear)
    y3 = bf16_fn(x2, w2, b2)
    jax.block_until_ready(y3)
    assert y3.shape == (B2, OUT2)
    assert jnp.allclose(y3.astype(jnp.float32), y2_ref, atol=1e-1, rtol=1e-1)

    print("KERNEL_OK")
</pallas_src>

<mosaic_0001>
module attributes {stable_mosaic.version = 11 : i64} {
  func.func @_col_inv_norm_kernel(%arg0: i32, %arg1: memref<128x32xf32, #tpu.memory_space<vmem>>, %arg2: memref<1x32xf32, #tpu.memory_space<vmem>>) attributes {dimension_semantics = [#tpu.dimension_semantics<arbitrary>], iteration_bounds = array<i64: 1>, scalar_prefetch = 0 : i64, scratch_operands = 0 : i64, tpu.core_type = #tpu.core_type<tc>, window_params = [{transform_indices = @transform_0, window_bounds = array<i64: 128, 32>}, {pipeline_mode = #tpu.pipeline_mode<synchronous>, transform_indices = @transform_1, window_bounds = array<i64: 1, 32>}]} {
    %c0_i32 = arith.constant 0 : i32
    %0 = arith.cmpi eq, %arg0, %c0_i32 : i32
    %1 = arith.extui %0 : i1 to i32
    %c0_i32_0 = arith.constant 0 : i32
    %2 = arith.cmpi ne, %1, %c0_i32_0 : i32
    scf.if %2 {
      %cst_8 = arith.constant 0.000000e+00 : f32
      %13 = vector.broadcast %cst_8 : f32 to vector<1x32xf32>
      %c0_9 = arith.constant 0 : index
      %c0_10 = arith.constant 0 : index
      %14 = vector.load %arg2[%c0_9, %c0_10] : memref<1x32xf32, #tpu.memory_space<vmem>>, vector<1x32xf32>
      tpu.vector_store %arg2[%c0_9, %c0_10], %13 {strides = array<i32>} : memref<1x32xf32, #tpu.memory_space<vmem>>, vector<1x32xf32>,
    } else {
    }
    %c0 = arith.constant 0 : index
    %c0_1 = arith.constant 0 : index
    %3 = vector.load %arg1[%c0, %c0_1] : memref<128x32xf32, #tpu.memory_space<vmem>>, vector<128x32xf32>
    %c0_2 = arith.constant 0 : index
    %c0_3 = arith.constant 0 : index
    %4 = vector.load %arg2[%c0_2, %c0_3] : memref<1x32xf32, #tpu.memory_space<vmem>>, vector<1x32xf32>
    %5 = arith.mulf %3, %3 : vector<128x32xf32>
    %cst = arith.constant dense<0.000000e+00> : vector<32xf32>
    %6 = vector.multi_reduction <add>, %5, %cst [0] : vector<128x32xf32> to vector<32xf32>
    %7 = vector.shape_cast %6 : vector<32xf32> to vector<1x32xf32>
    %8 = arith.addf %4, %7 : vector<1x32xf32>
    %c0_4 = arith.constant 0 : index
    %c0_5 = arith.constant 0 : index
    %9 = vector.load %arg2[%c0_4, %c0_5] : memref<1x32xf32, #tpu.memory_space<vmem>>, vector<1x32xf32>
    tpu.vector_store %arg2[%c0_4, %c0_5], %8 {strides = array<i32>} : memref<1x32xf32, #tpu.memory_space<vmem>>, vector<1x32xf32>,
    %c0_i32_6 = arith.constant 0 : i32
    %10 = arith.cmpi eq, %arg0, %c0_i32_6 : i32
    %11 = arith.extui %10 : i1 to i32
    %c0_i32_7 = arith.constant 0 : i32
    %12 = arith.cmpi ne, %11, %c0_i32_7 : i32
    scf.if %12 {
      %c0_8 = arith.constant 0 : index
      %c0_9 = arith.constant 0 : index
      %13 = vector.load %arg2[%c0_8, %c0_9] : memref<1x32xf32, #tpu.memory_space<vmem>>, vector<1x32xf32>
      %14 = math.rsqrt %13 : vector<1x32xf32>
      %c0_10 = arith.constant 0 : index
      %c0_11 = arith.constant 0 : index
      %15 = vector.load %arg2[%c0_10, %c0_11] : memref<1x32xf32, #tpu.memory_space<vmem>>, vector<1x32xf32>
      tpu.vector_store %arg2[%c0_10, %c0_11], %14 {strides = array<i32>} : memref<1x32xf32, #tpu.memory_space<vmem>>, vector<1x32xf32>,
    } else {
    }
    return
  }
  func.func @transform_0(%arg0: i32) -> (i32, i32) {
    %c0_i32 = arith.constant 0 : i32
    %c0_i32_0 = arith.constant 0 : i32
    return %arg0, %c0_i32 : i32, i32
  }
  func.func @transform_1(%arg0: i32) -> (i32, i32) {
    %c0_i32 = arith.constant 0 : i32
    %c0_i32_0 = arith.constant 0 : i32
    %c0_i32_1 = arith.constant 0 : i32
    return %c0_i32, %c0_i32_0 : i32, i32
  }
}

module attributes {stable_mosaic.version = 11 : i64} {
  func.func @_normalized_linear_kernel(%arg0: i32, %arg1: i32, %arg2: memref<8x32xf32, #tpu.memory_space<vmem>>, %arg3: memref<1x32xf32, #tpu.memory_space<vmem>>, %arg4: memref<128x32xf32, #tpu.memory_space<vmem>>, %arg5: memref<1x128xf32, #tpu.memory_space<vmem>>, %arg6: memref<8x128xf32, #tpu.memory_space<vmem>>, %arg7: memref<8x32xf32, #tpu.memory_space<vmem>>) attributes {dimension_semantics = [#tpu.dimension_semantics<parallel>, #tpu.dimension_semantics<arbitrary>], iteration_bounds = array<i64: 1, 1>, scalar_prefetch = 0 : i64, scratch_operands = 1 : i64, tpu.core_type = #tpu.core_type<tc>, window_params = [{transform_indices = @transform_0, window_bounds = array<i64: 8, 32>}, {pipeline_mode = #tpu.pipeline_mode<synchronous>, transform_indices = @transform_1, window_bounds = array<i64: 1, 32>}, {transform_indices = @transform_2, window_bounds = array<i64: 128, 32>}, {transform_indices = @transform_3, window_bounds = array<i64: 1, 128>}, {transform_indices = @transform_4, window_bounds = array<i64: 8, 128>}]} {
    %c0_i32 = arith.constant 0 : i32
    %0 = arith.cmpi eq, %arg1, %c0_i32 : i32
    %1 = arith.extui %0 : i1 to i32
    %c0_i32_0 = arith.constant 0 : i32
    %2 = arith.cmpi ne, %1, %c0_i32_0 : i32
    scf.if %2 {
      %c0_8 = arith.constant 0 : index
      %c0_9 = arith.constant 0 : index
      %10 = vector.load %arg2[%c0_8, %c0_9] : memref<8x32xf32, #tpu.memory_space<vmem>>, vector<8x32xf32>
      %c0_10 = arith.constant 0 : index
      %c0_11 = arith.constant 0 : index
      %11 = vector.load %arg3[%c0_10, %c0_11] : memref<1x32xf32, #tpu.memory_space<vmem>>, vector<1x32xf32>
      %12 = vector.broadcast %11 : vector<1x32xf32> to vector<8x32xf32>
      %13 = arith.mulf %10, %12 : vector<8x32xf32>
      %c0_12 = arith.constant 0 : index
      %c0_13 = arith.constant 0 : index
      %14 = vector.load %arg7[%c0_12, %c0_13] : memref<8x32xf32, #tpu.memory_space<vmem>>, vector<8x32xf32>
      tpu.vector_store %arg7[%c0_12, %c0_13], %13 {strides = array<i32>} : memref<8x32xf32, #tpu.memory_space<vmem>>, vector<8x32xf32>,
    } else {
    }
    %c0 = arith.constant 0 : index
    %c0_1 = arith.constant 0 : index
    %3 = vector.load %arg7[%c0, %c0_1] : memref<8x32xf32, #tpu.memory_space<vmem>>, vector<8x32xf32>
    %c0_2 = arith.constant 0 : index
    %c0_3 = arith.constant 0 : index
    %4 = vector.load %arg4[%c0_2, %c0_3] : memref<128x32xf32, #tpu.memory_space<vmem>>, vector<128x32xf32>
    %cst = arith.constant dense<0.000000e+00> : vector<8x128xf32>
    %5 = tpu.matmul %3, %4, %cst {dimension_numbers = #tpu.dot_dimension_numbers<[1], [1], [0], [0], [0, 0, 1, 0], [], []>} : vector<8x32xf32>, vector<128x32xf32>, vector<8x128xf32> -> vector<8x128xf32>
    %c0_4 = arith.constant 0 : index
    %c0_5 = arith.constant 0 : index
    %6 = vector.load %arg5[%c0_4, %c0_5] : memref<1x128xf32, #tpu.memory_space<vmem>>, vector<1x128xf32>
    %7 = vector.broadcast %6 : vector<1x128xf32> to vector<8x128xf32>
    %8 = arith.addf %5, %7 : vector<8x128xf32>
    %c0_6 = arith.constant 0 : index
    %c0_7 = arith.constant 0 : index
    %9 = vector.load %arg6[%c0_6, %c0_7] : memref<8x128xf32, #tpu.memory_space<vmem>>, vector<8x128xf32>
    tpu.vector_store %arg6[%c0_6, %c0_7], %8 {strides = array<i32>} : memref<8x128xf32, #tpu.memory_space<vmem>>, vector<8x128xf32>,
    return
  }
  func.func @transform_0(%arg0: i32, %arg1: i32) -> (i32, i32) {
    %c0_i32 = arith.constant 0 : i32
    %c0_i32_0 = arith.constant 0 : i32
    return %arg0, %c0_i32 : i32, i32
  }
  func.func @transform_1(%arg0: i32, %arg1: i32) -> (i32, i32) {
    %c0_i32 = arith.constant 0 : i32
    %c0_i32_0 = arith.constant 0 : i32
    %c0_i32_1 = arith.constant 0 : i32
    return %c0_i32, %c0_i32_0 : i32, i32
  }
  func.func @transform_2(%arg0: i32, %arg1: i32) -> (i32, i32) {
    %c0_i32 = arith.constant 0 : i32
    %c0_i32_0 = arith.constant 0 : i32
    return %arg1, %c0_i32 : i32, i32
  }
  func.func @transform_3(%arg0: i32, %arg1: i32) -> (i32, i32) {
    %c0_i32 = arith.constant 0 : i32
    %c0_i32_0 = arith.constant 0 : i32
    return %c0_i32, %arg1 : i32, i32
  }
  func.func @transform_4(%arg0: i32, %arg1: i32) -> (i32, i32) {
    %c0_i32 = arith.constant 0 : i32
    return %arg0, %arg1 : i32, i32
  }
}

</mosaic_0001>

<bundles_post_ra>
// kernel: normalized_linear.2
= control target key start
LH: loop header
LB: loop body
LE: loop exit
PB: predicated region body
PF: predicated region fallthrough
CT: control target
= control target key end

     0   :  { %vm12_vm0 = vcmask 253952   ;;  %v101_v0 = vmov 0.0   ;;  %vm47_vm1 = vcmask 261120   ;;  %s194_s1 = inlined_call_operand.vmem [shape: f32[1,32], index: 1, kind: output, shape index: {}]   ;;  %s195_s0 = inlined_call_operand.vmem [shape: f32[128,32], index: 0, kind: input, shape index: {}]  }
   0x1   :  { %13 = vst.msk [vmem:[%s194_s1] sm:$0x1] %vm12_vm0, %v101_v0  ;;  %v14_v1 = vld [vmem:[%s195_s0] sm:$0xff]  ;;  %v15_v2 = vld [vmem:[%s195_s0 + $0x8] sm:$0xff]  ;;  %v16_v3 = vld [vmem:[%s195_s0 + $0x10] sm:$0xff] }
   0x2   :  { %v17_v4 = vld [vmem:[%s195_s0 + $0x18] sm:$0xff]  ;;  %v18_v5 = vld [vmem:[%s195_s0 + $0x20] sm:$0xff]  ;;  %v31_v6 = vmul.f32 %v14_v1, %v14_v1  ;;  %v32_v7 = vmul.f32 %v15_v2, %v15_v2  ;;  %v33_v8 = vmul.f32 %v16_v3, %v16_v3  ;;  %v19_v10 = vld [vmem:[%s195_s0 + $0x28] sm:$0xff] }
   0x3   :  { %v34_v9 = vmul.f32 %v17_v4, %v17_v4  ;;  %v35_v12 = vmul.f32 %v18_v5, %v18_v5  ;;  %v20_v14 = vld [vmem:[%s195_s0 + $0x30] sm:$0xff]  ;;  %v36_v16 = vmul.f32 %v19_v10, %v19_v10  ;;  %v21_v19 = vld [vmem:[%s195_s0 + $0x38] sm:$0xff]  ;;  %v22_v23 = vld [vmem:[%s195_s0 + $0x40] sm:$0xff] }
   0x4   :  { %v48_v11 = vsel %vm47_vm1, %v31_v6, 0.0  ;;  %v49_v13 = vsel %vm47_vm1, %v32_v7, 0.0  ;;  %v51_v17 = vsel %vm47_vm1, %v33_v8, 0.0  ;;  %v37_v21 = vmul.f32 %v20_v14, %v20_v14  ;;  %v23_v27 = vld [vmem:[%s195_s0 + $0x48] sm:$0xff]  ;;  %v24_v31 = vld [vmem:[%s195_s0 + $0x50] sm:$0xff]  ;;  %v25_v35 = vld [vmem:[%s195_s0 + $0x58] sm:$0xff] }
   0x5   :  { %v50_v15 = vadd.f32 %v49_v13, %v48_v11  ;;  %v53_v18 = vsel %vm47_vm1, %v34_v9, 0.0  ;;  %v55_v22 = vsel %vm47_vm1, %v35_v12, 0.0  ;;  %v38_v25 = vmul.f32 %v21_v19, %v21_v19  ;;  %v26_v39 = vld [vmem:[%s195_s0 + $0x60] sm:$0xff]  ;;  %v27_v43 = vld [vmem:[%s195_s0 + $0x68] sm:$0xff]  ;;  %v28_v47 = vld [vmem:[%s195_s0 + $0x70] sm:$0xff] }
   0x6   :  { %v57_v26 = vsel %vm47_vm1, %v36_v16, 0.0  ;;  %v39_v29 = vmul.f32 %v22_v23, %v22_v23  ;;  %v59_v30 = vsel %vm47_vm1, %v37_v21, 0.0  ;;  %v40_v33 = vmul.f32 %v23_v27, %v23_v27  ;;  %v29_v51 = vld [vmem:[%s195_s0 + $0x78] sm:$0xff] }
   0x7   :  { %v52_v20 = vadd.f32 %v51_v17, %v50_v15  ;;  %v61_v34 = vsel %vm47_vm1, %v38_v25, 0.0  ;;  %v41_v37 = vmul.f32 %v24_v31, %v24_v31  ;;  %v42_v41 = vmul.f32 %v25_v35, %v25_v35 }
   0x8   :  { %v63_v38 = vsel %vm47_vm1, %v39_v29, 0.0  ;;  %v65_v42 = vsel %vm47_vm1, %v40_v33, 0.0  ;;  %v43_v45 = vmul.f32 %v26_v39, %v26_v39  ;;  %v44_v49 = vmul.f32 %v27_v43, %v27_v43  ;;  %v30_v5 = vld [vmem:[%s194_s1] sm:$0x1] }
   0x9   :  { %v54_v24 = vadd.f32 %v53_v18, %v52_v20  ;;  %v67_v46 = vsel %vm47_vm1, %v41_v37, 0.0  ;;  %v69_v50 = vsel %vm47_vm1, %v42_v41, 0.0  ;;  %v45_v53 = vmul.f32 %v28_v47, %v28_v47 }
   0xa   :  { %v71_v54 = vsel %vm47_vm1, %v43_v45, 0.0  ;;  %v46_v56 = vmul.f32 %v29_v51, %v29_v51  ;;  %v73_v57 = vsel %vm47_vm1, %v44_v49, 0.0 }
   0xb   :  { %v56_v28 = vadd.f32 %v55_v22, %v54_v24  ;;  %v75_v59 = vsel %vm47_vm1, %v45_v53, 0.0 }
   0xc   :  { %v77_v61 = vsel %vm47_vm1, %v46_v56, 0.0 }
   0xd   :  { %v58_v32 = vadd.f32 %v57_v26, %v56_v28 }
   0xf   :  { %v60_v36 = vadd.f32 %v59_v30, %v58_v32 }
  0x11   :  { %v62_v40 = vadd.f32 %v61_v34, %v60_v36 }
  0x13   :  { %v64_v44 = vadd.f32 %v63_v38, %v62_v40 }
  0x15   :  { %v66_v48 = vadd.f32 %v65_v42, %v64_v44 }
  0x17   :  { %v68_v52 = vadd.f32 %v67_v46, %v66_v48 }
  0x19   :  { %v70_v55 = vadd.f32 %v69_v50, %v68_v52 }
  0x1b   :  { %v72_v58 = vadd.f32 %v71_v54, %v70_v55 }
  0x1d   :  { %v74_v60 = vadd.f32 %v73_v57, %v72_v58 }
  0x1f   :  { %v76_v62 = vadd.f32 %v75_v59, %v74_v60 }
  0x21   :  { %v78_v63 = vadd.f32 %v77_v61, %v76_v62 }
  0x23   :  { %v79_v0 = vrot.slane %v78_v63, 4 }
  0x25   :  { %v80_v1 = vadd.f32 %v79_v0, %v78_v63 }
  0x27   :  { %v81_v2 = vrot.slane %v80_v1, 2 }
  0x29   :  { %v82_v3 = vadd.f32 %v81_v2, %v80_v1 }
  0x2b   :  { %v83_v4 = vrot.slane %v82_v3, 1 }
  0x2d   :  { %v84_v6 = vadd.f32 %v83_v4, %v82_v3 }
  0x2f   :  { %v85_v7 = vadd.f32 %v84_v6, %v30_v5 }
  0x31   :  { %87 = vst.msk [vmem:[%s194_s1] sm:$0x1] %vm12_vm0, %v85_v7 }
  0x38   :  { %v91_v8 = vld [vmem:[%s194_s1] sm:$0x1] }
  0x39   :  { %99 = vrsqrt.f32 %v91_v8 }
  0x43   :  { %v100_v9 = vpop.eup %99 }
  0x44   :  { %93 = vst.msk [vmem:[%s194_s1] sm:$0x1] %vm12_vm0, %v100_v9 }

// kernel: normalized_linear.3
= control target key start
LH: loop header
LB: loop body
LE: loop exit
PB: predicated region body
PF: predicated region fallthrough
CT: control target
= control target key end

     0   :  { %vm31_vm0 = vcmask 261120   ;;  %v325_v3 = vmov 0.0|0.0   ;;  %vm326_vm2 = vmmov 0   ;;  %v327_v8 = vmov 0.0   ;;  %s447_s0 = inlined_call_operand.vmem [shape: f32[8,32], index: 0, kind: input, shape index: {}]   ;;  %s448_s1 = inlined_call_operand.vmem [shape: f32[1,32], index: 1, kind: input, shape index: {}]   ;;  %s449_s2 = inlined_call_operand.vmem [shape: f32[128,32], index: 2, kind: input, shape index: {}]   ;;  %s450_s3 = inlined_call_operand.vmem [shape: f32[1,128], index: 3, kind: input, shape index: {}]   ;;  %s451_s4 = inlined_call_operand.hbm [shape: f32[8,128], index: 4, kind: output, shape index: {}]  }
   0x1   :  { %v22_v0 = vld [vmem:[%s447_s0] sm:$0xff]  ;;  %265 = vmatprep.subr.bf16.mxu0 %v325_v3  ;;  %v35_v5 = vld [vmem:[%s449_s2 + $0x8] sm:$0xff]  ;;  %vm368_vm1 = vmpackc.low %vm31_vm0, %vm31_vm0  ;;  %262 = vmatprep.mubr.msk.f32.mxu0 %vm326_vm2, %v327_v8 }
   0x2   :  { %v194_v1 = vld [vmem:[%s448_s1] ss:$0 sm:$0xff]  ;;  %v36_v9 = vld [vmem:[%s449_s2 + $0x10] sm:$0xff]  ;;  %v37_v10 = vld [vmem:[%s449_s2 + $0x18] sm:$0xff] }
   0x3   :  { %v34_v2 = vld [vmem:[%s449_s2] sm:$0xff]  ;;  %v30_v4 = vmul.f32 %v194_v1, %v22_v0 }
   0x4   :  { %v266_v7 = vpack.c.bf16 %v35_v5, %v34_v2 }
   0x5   :  { %32 = vst.msk [vmem:[#allocation2] sm:$0xff] %vm31_vm0, %v30_v4 }
   0x6   :  { %268 = vmatpush3.bf16.xpose.msk.msra.mxu0 %vm368_vm1, %v266_v7 }
   0x7   :  { %269 = vmatprep.subr.bf16.mxu0 %v325_v3 }
   0x8   :  { %9 = vsyncpa [#allocation4], 0  ;;  %v270_v11 = vpack.c.bf16 %v37_v10, %v36_v9  ;;  %v38_v12 = vld [vmem:[%s449_s2 + $0x20] sm:$0xff]  ;;  %v39_v13 = vld [vmem:[%s449_s2 + $0x28] sm:$0xff]  ;;  %s328_s23 = smov [#allocation3]  }
   0x9   :  { %v274_v14 = vpack.c.bf16 %v39_v13, %v38_v12  ;;  %v40_v15 = vld [vmem:[%s449_s2 + $0x30] sm:$0xff]  ;;  %v41_v16 = vld [vmem:[%s449_s2 + $0x38] sm:$0xff]  ;;  %v42_v18 = vld [vmem:[%s449_s2 + $0x40] sm:$0xff]  ;;  %s186_s24 = sshll.u32 %s328_s23, 4  ;;  %s187_s24 = int_to_ptr.vmem [resolvable:$true] %s186_s24 }
   0xa   :  { %v278_v17 = vpack.c.bf16 %v41_v16, %v40_v15  ;;  %v43_v19 = vld [vmem:[%s449_s2 + $0x48] sm:$0xff]  ;;  %v44_v21 = vld [vmem:[%s449_s2 + $0x50] sm:$0xff]  ;;  %v45_v22 = vld [vmem:[%s449_s2 + $0x58] sm:$0xff]  ;;  %s301_s25 = scalar_lea.vmem %s187_s24, 128  ;;  %p306_p1 = scmp.lt.s32.totalorder %s187_s24, %s187_s24 }
   0xb   :  { %v282_v20 = vpack.c.bf16 %v43_v19, %v42_v18  ;;  %v286_v23 = vpack.c.bf16 %v45_v22, %v44_v21  ;;  %v46_v24 = vld [vmem:[%s449_s2 + $0x60] sm:$0xff]  ;;  %v47_v25 = vld [vmem:[%s449_s2 + $0x68] sm:$0xff]  ;;  %v48_v27 = vld [vmem:[%s449_s2 + $0x70] sm:$0xff]  ;;  %p302_p0 = scmp.ne.s32.totalorder %s187_s24, %s301_s25  ;;  %p307_p2 = scmp.lt.s32.totalorder %s301_s25, %s301_s25 }
   0xc   :  { %v290_v26 = vpack.c.bf16 %v47_v25, %v46_v24  ;;  %v49_v28 = vld [vmem:[%s449_s2 + $0x78] sm:$0xff]  ;;  %v33_v30 = vld [vmem:[#allocation2] sm:$0xff] }
   0xd   :  { %v294_v29 = vpack.c.bf16 %v49_v28, %v48_v27  ;;  %v195_v31 = vld [vmem:[%s450_s3] ss:$0 sm:$0xff]  ;;  %p308_p3 = por %p307_p2, %p306_p1 }
   0xe   :  { %272 = vmatpush3.bf16.xpose.msk.msra.mxu0 %vm368_vm1, %v270_v11 }
   0xf   :  { %273 = vmatprep.subr.bf16.mxu0 %v325_v3  ;;  %p309_p4 = pnand %p308_p3, %p302_p0 }
  0x16   :  { %276 = vmatpush3.bf16.xpose.msk.msra.mxu0 %vm368_vm1, %v274_v14 }
  0x17   :  { %277 = vmatprep.subr.bf16.mxu0 %v325_v3 }
  0x1e   :  { %280 = vmatpush3.bf16.xpose.msk.msra.mxu0 %vm368_vm1, %v278_v17 }
  0x1f   :  { %281 = vmatprep.subr.bf16.mxu0 %v325_v3 }
  0x26   :  { %284 = vmatpush3.bf16.xpose.msk.msra.mxu0 %vm368_vm1, %v282_v20 }
  0x27   :  { %285 = vmatprep.subr.bf16.mxu0 %v325_v3 }
  0x2e   :  { %288 = vmatpush3.bf16.xpose.msk.msra.mxu0 %vm368_vm1, %v286_v23 }
  0x2f   :  { %289 = vmatprep.subr.bf16.mxu0 %v325_v3 }
  0x36   :  { %292 = vmatpush3.bf16.xpose.msk.msra.mxu0 %vm368_vm1, %v290_v26 }
  0x37   :  { %293 = vmatprep.subr.bf16.mxu0 %v325_v3 }
  0x3e   :  { %296 = vmatpush3.bf16.xpose.msk.msra.mxu0 %vm368_vm1, %v294_v29 }
  0x45   :  { %263 = vmatmul.mubr.msk.f32.vlgmr.msra.gmra.mrb[0].mxu0 %vm31_vm0, %v33_v30 }
 0x118   :  { %v175_v32 = vpop.f32.mrb[0].mxu0 }
 0x119   :  { %v176_v33 = vadd.f32 %v195_v31, %v175_v32  ;;  %v264_v34 = vpop.f32.mrb[1].mxu0 }
 0x11b   :  { %179 = vst [vmem:[#allocation3] sm:$0xff] %v176_v33 }
 0x11c   :  { %312 = shalt.err (!%p309_p4)
}
 0x11d   :  { %s313_s27 = scalar_lea.hbm %s451_s4, 128 }
 0x11e   :  { %p314_p5 = scmp.ne.s32.totalorder %s451_s4, %s313_s27  ;;  %p317_p6 = scmp.lt.u32.totalorder %s313_s27, %s451_s4 }
 0x120   :  { %p319_p7 = pnand %p317_p6, %p314_p5 }
 0x122   :  { %322 = shalt.err (!%p319_p7)
}
 0x123   :  { %189 = dma.vmem_to_hbm [thread:$0]  %s187_s24, 128, %s451_s4, [#allocation4]  }
 0x124   :  { %323 = dma.done.wait [#allocation4], 128  }
 0x125   :  { %324 = vsyncadd [#allocation4], 4294967168 }
 0x126   :  { %193 = vsyncpa [#allocation4], 1 }

</bundles_post_ra>
